<compile_context>
chip_gen: v6e
topology: v6e:2x2x1
jax: 0.10.0
libtpu: 0.0.40
codegen_flags: <defaults>
</compile_context>

<pallas_src>
import functools

import jax
import jax.numpy as jnp
from jax import lax
from jax.experimental import pallas as pl
from jax.experimental.pallas import tpu as pltpu


def _self_attention_kernel(x_bf_ref, x_res_ref, wqk_ref, bqk_ref, wv_ref,
                           bv_ref, bias_ref, gamma_ref, o_ref,
                           qk_scr, v_scr,
                           *, cq_pad, tq, n_pad, proj_chunk, mask_pad):
    """Kernel-visible shapes (batch dim squeezed by BlockSpec):

      x_bf_ref : (C, n_pad)        bf16  full spatial slab (projections only)
      x_res_ref: (C, tq)           f32   residual tile for this grid step
      wqk_ref  : (2*cq_pad, C)     bf16  stacked, channel-padded q/k weights
      bqk_ref  : (2*cq_pad, 1)     f32
      wv_ref   : (C, C)            bf16
      bv_ref   : (C, 1)            f32
      bias_ref : (1, n_pad)        f32   0 for valid keys, -1e30 for padding
      gamma_ref: (1, 1)            f32   (SMEM)
      o_ref    : (C, tq)           f32
      qk_scr   : (2*cq_pad, n_pad) bf16  cached q (rows [:cq_pad]) / k (rest)
      v_scr    : (C, n_pad)        bf16
    """
    qi = pl.program_id(1)

    # --- per-batch q/k/v projections (1x1 convs), cached in bf16 scratch ----
    @pl.when(qi == 0)
    def _():
        def project(c, carry):
            s = pl.multiple_of(c * proj_chunk, 128)
            xb = x_bf_ref[:, pl.ds(s, proj_chunk)]                   # (C, chunk)
            qk = jnp.dot(wqk_ref[...], xb,
                         preferred_element_type=jnp.float32) + bqk_ref[...]
            qk_scr[:, pl.ds(s, proj_chunk)] = qk.astype(jnp.bfloat16)
            v = jnp.dot(wv_ref[...], xb,
                        preferred_element_type=jnp.float32) + bv_ref[...]
            v_scr[:, pl.ds(s, proj_chunk)] = v.astype(jnp.bfloat16)
            return carry
        lax.fori_loop(0, n_pad // proj_chunk, project, 0)

    # --- attention for this query-row tile ----------------------------------
    qs = pl.multiple_of(qi * tq, 128)
    q_tile = qk_scr[pl.ds(0, cq_pad), pl.ds(qs, tq)]                 # (Cqp, TQ)
    k_all = qk_scr[pl.ds(cq_pad, cq_pad), :]                         # (Cqp, Np)

    # energy[i, j] = sum_c q[c, i] * k[c, j]   (no materialized q transpose)
    energy = lax.dot_general(
        q_tile, k_all,
        dimension_numbers=(((0,), (0,)), ((), ())),
        preferred_element_type=jnp.float32)                          # (TQ, Np)

    if mask_pad:
        energy = energy + bias_ref[...]            # single broadcast add

    # Numerically stable softmax; normalization deferred to the epilogue.
    m = jnp.max(energy, axis=-1, keepdims=True)                      # (TQ, 1)
    p = jnp.exp(energy - m)                                          # (TQ, Np)
    denom = jnp.sum(p, axis=-1, keepdims=True)                       # (TQ, 1)
    attn = p.astype(jnp.bfloat16)                                    # unnormalized

    # out[c, i] = sum_j v[c, j] * attn[i, j]   (no materialized attn transpose)
    out = lax.dot_general(
        v_scr[...], attn,
        dimension_numbers=(((1,), (1,)), ((), ())),
        preferred_element_type=jnp.float32)                          # (C, TQ)

    inv = jnp.transpose(pl.reciprocal(denom, approx=True))           # (1, TQ)
    gamma = gamma_ref[0, 0]
    o_ref[...] = gamma * (out * inv) + x_res_ref[...]


def _vmem_capacity_bytes():
    try:
        return int(pltpu.get_tpu_info().vmem_capacity_bytes)
    except Exception:
        return 64 * 1024 * 1024        # conservative (v7x-sized) fallback


def _pick_tiles(n_pad, vmem_cap):
    # f32 score-tile (TQ x n_pad) budget: ~4 MiB on 64 MiB chips (v7x),
    # ~16 MiB on 128 MiB chips (v5e/v6e) so TQ stays large at big N.
    if vmem_cap <= 64 * 1024 * 1024:
        budget = vmem_cap // 16
    else:
        budget = vmem_cap // 8
    tq = 512
    while tq > 128 and (n_pad % tq != 0 or tq * n_pad * 4 > budget):
        tq //= 2
    # Projection column chunk bounds the transient f32 qk/v intermediates.
    proj_chunk = 512
    while proj_chunk > 128 and n_pad % proj_chunk != 0:
        proj_chunk //= 2
    proj_chunk = min(proj_chunk, n_pad)
    return tq, proj_chunk


def self_attention(x, wq, bq, wk, bk, wv, bv, gamma):
    """x: (B, C, W, H) f32. wq/wk: (C//8, C), wv: (C, C), biases (Cq,1)/(C,1),
    gamma: (1, 1). Returns (B, C, W, H) f32 matching the PyTorch forward."""
    B, C, W, H = x.shape
    N = W * H
    Cq = wq.shape[0]
    n_pad = ((N + 127) // 128) * 128
    cq_pad = ((Cq + 15) // 16) * 16          # bf16 sublane tile alignment

    vmem_cap = _vmem_capacity_bytes()
    tq, proj_chunk = _pick_tiles(n_pad, vmem_cap)
    vmem_limit = max(32 * 1024 * 1024,
                     min(int(vmem_cap * 0.85), 100 * 1024 * 1024))

    x_flat = x.reshape(B, C, N).astype(jnp.float32)
    if n_pad != N:
        x_flat = jnp.pad(x_flat, ((0, 0), (0, 0), (0, n_pad - N)))
    x_bf = x_flat.astype(jnp.bfloat16)       # projection-only input (half DMA)

    # Pad q/k output channels to cq_pad with zero weights/biases (padded
    # channels contribute exactly 0 to the energy), then stack q over k.
    wq_p = jnp.pad(wq.astype(jnp.float32), ((0, cq_pad - Cq), (0, 0)))
    wk_p = jnp.pad(wk.astype(jnp.float32), ((0, cq_pad - Cq), (0, 0)))
    bq_p = jnp.pad(bq.astype(jnp.float32), ((0, cq_pad - Cq), (0, 0)))
    bk_p = jnp.pad(bk.astype(jnp.float32), ((0, cq_pad - Cq), (0, 0)))
    wqk = jnp.concatenate([wq_p, wk_p], axis=0).astype(jnp.bfloat16)  # (2Cqp, C)
    bqk = jnp.concatenate([bq_p, bk_p], axis=0)                       # (2Cqp, 1)
    wv_b = wv.astype(jnp.bfloat16)
    bv_f = bv.astype(jnp.float32)
    gamma_s = gamma.reshape(1, 1).astype(jnp.float32)

    # Additive key-padding bias: 0 for valid columns, -1e30 for padded ones.
    col = jnp.arange(n_pad, dtype=jnp.int32)
    key_bias = jnp.where(col < N, 0.0, -1e30).astype(jnp.float32).reshape(1, n_pad)

    kernel = functools.partial(
        _self_attention_kernel, cq_pad=cq_pad, tq=tq, n_pad=n_pad,
        proj_chunk=proj_chunk, mask_pad=(N < n_pad))

    out_flat = pl.pallas_call(
        kernel,
        out_shape=jax.ShapeDtypeStruct((B, C, n_pad), jnp.float32),
        grid_spec=pltpu.PrefetchScalarGridSpec(
            num_scalar_prefetch=0,
            grid=(B, n_pad // tq),
            in_specs=[
                # bf16 x slab: fetched once per batch element (projections).
                pl.BlockSpec((None, C, n_pad), lambda b, q: (b, 0, 0)),
                # f32 residual tile: pipelined per grid step.
                pl.BlockSpec((None, C, tq), lambda b, q: (b, 0, q)),
                pl.BlockSpec((2 * cq_pad, C), lambda b, q: (0, 0)),    # wqk
                pl.BlockSpec((2 * cq_pad, 1), lambda b, q: (0, 0)),    # bqk
                pl.BlockSpec((C, C), lambda b, q: (0, 0)),             # wv
                pl.BlockSpec((C, 1), lambda b, q: (0, 0)),             # bv
                pl.BlockSpec((1, n_pad), lambda b, q: (0, 0)),         # key bias
                pl.BlockSpec(memory_space=pltpu.MemorySpace.SMEM),     # gamma
            ],
            out_specs=pl.BlockSpec((None, C, tq), lambda b, q: (b, 0, q)),
            scratch_shapes=[
                pltpu.VMEM((2 * cq_pad, n_pad), jnp.bfloat16),  # q|k cache
                pltpu.VMEM((C, n_pad), jnp.bfloat16),           # v cache
            ],
        ),
        compiler_params=pltpu.CompilerParams(
            dimension_semantics=("parallel", "arbitrary"),
            vmem_limit_bytes=vmem_limit),
    )(x_bf, x_flat, wqk, bqk, wv_b, bv_f, key_bias, gamma_s)

    return out_flat[:, :, :N].reshape(B, C, W, H)


def reference_forward(x, wq, bq, wk, bk, wv, bv, gamma):
    """Pure-JAX f32 mirror of the PyTorch forward pass (for verification)."""
    B, C, W, H = x.shape
    N = W * H
    xf = x.reshape(B, C, N)
    q = jnp.einsum('oc,bcn->bon', wq, xf) + bq[None]       # (B, Cq, N)
    k = jnp.einsum('oc,bcn->bon', wk, xf) + bk[None]       # (B, Cq, N)
    v = jnp.einsum('oc,bcn->bon', wv, xf) + bv[None]       # (B, C,  N)
    energy = jnp.einsum('bqi,bqj->bij', q, k)              # (B, N, N)
    attn = jax.nn.softmax(energy, axis=-1)
    out = jnp.einsum('bcj,bij->bci', v, attn)              # (B, C, N)
    out = gamma[0, 0] * out + xf
    return out.reshape(B, C, W, H)


if __name__ == "__main__":
    # batch=2, in_channels=16 (query/key channels = 16//8 = 2), spatial 8x8
    # -> N = 64 (padded to 128 inside the wrapper).
    B, C, W, H = 2, 16, 8, 8
    Cq = C // 8

    key = jax.random.PRNGKey(0)
    k_x, k_wq, k_bq, k_wk, k_bk, k_wv, k_bv = jax.random.split(key, 7)

    x = jax.random.normal(k_x, (B, C, W, H), dtype=jnp.float32)
    # 1x1 Conv2d weights are (out, in, 1, 1); kept as (out, in).
    wq = jax.random.normal(k_wq, (Cq, C), dtype=jnp.float32) * 0.1
    bq = jax.random.normal(k_bq, (Cq, 1), dtype=jnp.float32) * 0.1
    wk = jax.random.normal(k_wk, (Cq, C), dtype=jnp.float32) * 0.1
    bk = jax.random.normal(k_bk, (Cq, 1), dtype=jnp.float32) * 0.1
    wv = jax.random.normal(k_wv, (C, C), dtype=jnp.float32) * 0.1
    bv = jax.random.normal(k_bv, (C, 1), dtype=jnp.float32) * 0.1
    # PyTorch inits gamma to 0 (output == x); use nonzero so the attention
    # path is actually exercised by the check below.
    gamma = jnp.array([[0.5]], dtype=jnp.float32)

    out = self_attention(x, wq, bq, wk, bk, wv, bv, gamma)
    out = jax.block_until_ready(out)

    ref = reference_forward(x, wq, bq, wk, bk, wv, bv, gamma)
    assert out.shape == (B, C, W, H)
    max_err = float(jnp.max(jnp.abs(out - ref)))
    # bf16 MXU operands + approx reciprocal => loosened tolerance.
    assert jnp.allclose(out, ref, atol=5e-2, rtol=5e-2), (
        f"mismatch vs reference (max abs err {max_err})")

    print("KERNEL_OK")
</pallas_src>

<mosaic_0001>
module attributes {stable_mosaic.version = 11 : i64} {
  func.func @_self_attention_kernel(%arg0: i32, %arg1: i32, %arg2: memref<1x16x128xbf16, #tpu.memory_space<vmem>>, %arg3: memref<1x16x128xf32, #tpu.memory_space<vmem>>, %arg4: memref<32x16xbf16, #tpu.memory_space<vmem>>, %arg5: memref<32x1xf32, #tpu.memory_space<vmem>>, %arg6: memref<16x16xbf16, #tpu.memory_space<vmem>>, %arg7: memref<16x1xf32, #tpu.memory_space<vmem>>, %arg8: memref<1x128xf32, #tpu.memory_space<vmem>>, %arg9: memref<1x1xf32, #tpu.memory_space<smem>>, %arg10: memref<1x16x128xf32, #tpu.memory_space<vmem>>, %arg11: memref<32x128xbf16, #tpu.memory_space<vmem>>, %arg12: memref<16x128xbf16, #tpu.memory_space<vmem>>) attributes {dimension_semantics = [#tpu.dimension_semantics<parallel>, #tpu.dimension_semantics<arbitrary>], iteration_bounds = array<i64: 2, 1>, scalar_prefetch = 0 : i64, scratch_operands = 2 : i64, tpu.core_type = #tpu.core_type<tc>, window_params = [{transform_indices = @transform_0, window_bounds = array<i64: 1, 16, 128>}, {transform_indices = @transform_1, window_bounds = array<i64: 1, 16, 128>}, {pipeline_mode = #tpu.pipeline_mode<synchronous>, transform_indices = @transform_2, window_bounds = array<i64: 32, 16>}, {pipeline_mode = #tpu.pipeline_mode<synchronous>, transform_indices = @transform_3, window_bounds = array<i64: 32, 1>}, {pipeline_mode = #tpu.pipeline_mode<synchronous>, transform_indices = @transform_4, window_bounds = array<i64: 16, 16>}, {pipeline_mode = #tpu.pipeline_mode<synchronous>, transform_indices = @transform_5, window_bounds = array<i64: 16, 1>}, {pipeline_mode = #tpu.pipeline_mode<synchronous>, transform_indices = @transform_6, window_bounds = array<i64: 1, 128>}, {transform_indices = @transform_7, window_bounds = array<i64: 1, 1>}, {transform_indices = @transform_8, window_bounds = array<i64: 1, 16, 128>}]} {
    %c0_i32 = arith.constant 0 : i32
    %0 = arith.cmpi eq, %arg1, %c0_i32 : i32
    %1 = arith.extui %0 : i1 to i32
    %c0_i32_0 = arith.constant 0 : i32
    %2 = arith.cmpi ne, %1, %c0_i32_0 : i32
    scf.if %2 {
      %c0_i32_17 = arith.constant 0 : i32
      %c128_i32_18 = arith.constant 128 : i32
      %35 = arith.muli %c0_i32_17, %c128_i32_18 : i32
      %36 = tpu.assume_multiple %35, 128 : i32
      %c0_19 = arith.constant 0 : index
      %c0_20 = arith.constant 0 : index
      %37 = arith.index_cast %36 : i32 to index
      %38 = vector.load %arg2[%c0_19, %c0_20, %37] : memref<1x16x128xbf16, #tpu.memory_space<vmem>>, vector<1x16x128xbf16>
      %39 = vector.shape_cast %38 : vector<1x16x128xbf16> to vector<16x128xbf16>
      %c0_21 = arith.constant 0 : index
      %c0_22 = arith.constant 0 : index
      %40 = vector.load %arg4[%c0_21, %c0_22] : memref<32x16xbf16, #tpu.memory_space<vmem>>, vector<32x16xbf16>
      %cst_23 = arith.constant dense<0.000000e+00> : vector<32x128xf32>
      %41 = tpu.matmul %40, %39, %cst_23 {dimension_numbers = #tpu.dot_dimension_numbers<[1], [0], [0], [1], [0, 0, 1, 1], [], []>} : vector<32x16xbf16>, vector<16x128xbf16>, vector<32x128xf32> -> vector<32x128xf32>
      %c0_24 = arith.constant 0 : index
      %c0_25 = arith.constant 0 : index
      %42 = vector.load %arg5[%c0_24, %c0_25] : memref<32x1xf32, #tpu.memory_space<vmem>>, vector<32x1xf32>
      %43 = vector.broadcast %42 : vector<32x1xf32> to vector<32x128xf32>
      %44 = arith.addf %41, %43 : vector<32x128xf32>
      %45 = arith.truncf %44 : vector<32x128xf32> to vector<32x128xbf16>
      %c0_26 = arith.constant 0 : index
      %46 = arith.index_cast %36 : i32 to index
      %47 = vector.load %arg11[%c0_26, %46] : memref<32x128xbf16, #tpu.memory_space<vmem>>, vector<32x128xbf16>
      tpu.vector_store %arg11[%c0_26, %46], %45 {strides = array<i32>} : memref<32x128xbf16, #tpu.memory_space<vmem>>, vector<32x128xbf16>,
      %c0_27 = arith.constant 0 : index
      %c0_28 = arith.constant 0 : index
      %48 = vector.load %arg6[%c0_27, %c0_28] : memref<16x16xbf16, #tpu.memory_space<vmem>>, vector<16x16xbf16>
      %cst_29 = arith.constant dense<0.000000e+00> : vector<16x128xf32>
      %49 = tpu.matmul %48, %39, %cst_29 {dimension_numbers = #tpu.dot_dimension_numbers<[1], [0], [0], [1], [0, 0, 1, 1], [], []>} : vector<16x16xbf16>, vector<16x128xbf16>, vector<16x128xf32> -> vector<16x128xf32>
      %c0_30 = arith.constant 0 : index
      %c0_31 = arith.constant 0 : index
      %50 = vector.load %arg7[%c0_30, %c0_31] : memref<16x1xf32, #tpu.memory_space<vmem>>, vector<16x1xf32>
      %51 = vector.broadcast %50 : vector<16x1xf32> to vector<16x128xf32>
      %52 = arith.addf %49, %51 : vector<16x128xf32>
      %53 = arith.truncf %52 : vector<16x128xf32> to vector<16x128xbf16>
      %c0_32 = arith.constant 0 : index
      %54 = arith.index_cast %36 : i32 to index
      %55 = vector.load %arg12[%c0_32, %54] : memref<16x128xbf16, #tpu.memory_space<vmem>>, vector<16x128xbf16>
      tpu.vector_store %arg12[%c0_32, %54], %53 {strides = array<i32>} : memref<16x128xbf16, #tpu.memory_space<vmem>>, vector<16x128xbf16>,
      %c1_i32 = arith.constant 1 : i32
    } else {
    }
    %c128_i32 = arith.constant 128 : i32
    %3 = arith.muli %arg1, %c128_i32 : i32
    %4 = tpu.assume_multiple %3, 128 : i32
    %c0 = arith.constant 0 : index
    %5 = arith.index_cast %4 : i32 to index
    %6 = vector.load %arg11[%c0, %5] : memref<32x128xbf16, #tpu.memory_space<vmem>>, vector<16x128xbf16>
    %c16 = arith.constant 16 : index
    %c0_1 = arith.constant 0 : index
    %7 = vector.load %arg11[%c16, %c0_1] : memref<32x128xbf16, #tpu.memory_space<vmem>>, vector<16x128xbf16>
    %cst = arith.constant dense<0.000000e+00> : vector<128x128xf32>
    %8 = tpu.matmul %6, %7, %cst {dimension_numbers = #tpu.dot_dimension_numbers<[0], [0], [1], [1], [0, 1, 1, 1], [], []>} : vector<16x128xbf16>, vector<16x128xbf16>, vector<128x128xf32> -> vector<128x128xf32>
    %c0_2 = arith.constant 0 : index
    %c0_3 = arith.constant 0 : index
    %9 = vector.load %arg8[%c0_2, %c0_3] : memref<1x128xf32, #tpu.memory_space<vmem>>, vector<1x128xf32>
    %10 = vector.broadcast %9 : vector<1x128xf32> to vector<128x128xf32>
    %11 = arith.addf %8, %10 : vector<128x128xf32>
    %cst_4 = arith.constant dense<0xFF800000> : vector<128xf32>
    %12 = vector.multi_reduction <maximumf>, %11, %cst_4 [1] : vector<128x128xf32> to vector<128xf32>
    %13 = vector.shape_cast %12 : vector<128xf32> to vector<128x1xf32>
    %14 = vector.broadcast %13 : vector<128x1xf32> to vector<128x128xf32>
    %15 = arith.subf %11, %14 : vector<128x128xf32>
    %16 = math.exp %15 : vector<128x128xf32>
    %cst_5 = arith.constant dense<0.000000e+00> : vector<128xf32>
    %17 = vector.multi_reduction <add>, %16, %cst_5 [1] : vector<128x128xf32> to vector<128xf32>
    %18 = vector.shape_cast %17 : vector<128xf32> to vector<128x1xf32>
    %19 = arith.truncf %16 : vector<128x128xf32> to vector<128x128xbf16>
    %c0_6 = arith.constant 0 : index
    %c0_7 = arith.constant 0 : index
    %20 = vector.load %arg12[%c0_6, %c0_7] : memref<16x128xbf16, #tpu.memory_space<vmem>>, vector<16x128xbf16>
    %cst_8 = arith.constant dense<0.000000e+00> : vector<16x128xf32>
    %21 = tpu.matmul %20, %19, %cst_8 {dimension_numbers = #tpu.dot_dimension_numbers<[1], [1], [0], [0], [0, 0, 1, 0], [], []>} : vector<16x128xbf16>, vector<128x128xbf16>, vector<16x128xf32> -> vector<16x128xf32>
    %22 = tpu.reciprocal %18 {approx = true} : vector<128x1xf32> -> vector<128x1xf32>
    %23 = tpu.transpose %22, [1, 0] : vector<128x1xf32> -> vector<1x128xf32>
    %c0_9 = arith.constant 0 : index
    %c0_10 = arith.constant 0 : index
    %24 = memref.load %arg9[%c0_9, %c0_10] : memref<1x1xf32, #tpu.memory_space<smem>>
    %25 = vector.broadcast %23 : vector<1x128xf32> to vector<16x128xf32>
    %26 = arith.mulf %21, %25 : vector<16x128xf32>
    %27 = vector.broadcast %24 : f32 to vector<16x128xf32>
    %28 = arith.mulf %27, %26 : vector<16x128xf32>
    %c0_11 = arith.constant 0 : index
    %c0_12 = arith.constant 0 : index
    %c0_13 = arith.constant 0 : index
    %29 = vector.load %arg3[%c0_11, %c0_12, %c0_13] : memref<1x16x128xf32, #tpu.memory_space<vmem>>, vector<1x16x128xf32>
    %30 = vector.shape_cast %29 : vector<1x16x128xf32> to vector<16x128xf32>
    %31 = arith.addf %28, %30 : vector<16x128xf32>
    %c0_14 = arith.constant 0 : index
    %c0_15 = arith.constant 0 : index
    %c0_16 = arith.constant 0 : index
    %32 = vector.load %arg10[%c0_14, %c0_15, %c0_16] : memref<1x16x128xf32, #tpu.memory_space<vmem>>, vector<1x16x128xf32>
    %33 = vector.shape_cast %32 : vector<1x16x128xf32> to vector<16x128xf32>
    %34 = vector.shape_cast %31 : vector<16x128xf32> to vector<1x16x128xf32>
    tpu.vector_store %arg10[%c0_14, %c0_15, %c0_16], %34 {strides = array<i32>} : memref<1x16x128xf32, #tpu.memory_space<vmem>>, vector<1x16x128xf32>,
    return
  }
  func.func @transform_0(%arg0: i32, %arg1: i32) -> (i32, i32, i32) {
    %c0_i32 = arith.constant 0 : i32
    %c0_i32_0 = arith.constant 0 : i32
    %c0_i32_1 = arith.constant 0 : i32
    return %arg0, %c0_i32, %c0_i32_0 : i32, i32, i32
  }
  func.func @transform_1(%arg0: i32, %arg1: i32) -> (i32, i32, i32) {
    %c0_i32 = arith.constant 0 : i32
    %c0_i32_0 = arith.constant 0 : i32
    return %arg0, %c0_i32, %arg1 : i32, i32, i32
  }
  func.func @transform_2(%arg0: i32, %arg1: i32) -> (i32, i32) {
    %c0_i32 = arith.constant 0 : i32
    %c0_i32_0 = arith.constant 0 : i32
    %c0_i32_1 = arith.constant 0 : i32
    return %c0_i32, %c0_i32_0 : i32, i32
  }
  func.func @transform_3(%arg0: i32, %arg1: i32) -> (i32, i32) {
    %c0_i32 = arith.constant 0 : i32
    %c0_i32_0 = arith.constant 0 : i32
    %c0_i32_1 = arith.constant 0 : i32
    return %c0_i32, %c0_i32_0 : i32, i32
  }
  func.func @transform_4(%arg0: i32, %arg1: i32) -> (i32, i32) {
    %c0_i32 = arith.constant 0 : i32
    %c0_i32_0 = arith.constant 0 : i32
    %c0_i32_1 = arith.constant 0 : i32
    return %c0_i32, %c0_i32_0 : i32, i32
  }
  func.func @transform_5(%arg0: i32, %arg1: i32) -> (i32, i32) {
    %c0_i32 = arith.constant 0 : i32
    %c0_i32_0 = arith.constant 0 : i32
    %c0_i32_1 = arith.constant 0 : i32
    return %c0_i32, %c0_i32_0 : i32, i32
  }
  func.func @transform_6(%arg0: i32, %arg1: i32) -> (i32, i32) {
    %c0_i32 = arith.constant 0 : i32
    %c0_i32_0 = arith.constant 0 : i32
    %c0_i32_1 = arith.constant 0 : i32
    return %c0_i32, %c0_i32_0 : i32, i32
  }
  func.func @transform_7(%arg0: i32, %arg1: i32) -> (i32, i32) {
    %c0_i32 = arith.constant 0 : i32
    %c0_i32_0 = arith.constant 0 : i32
    %c0_i32_1 = arith.constant 0 : i32
    return %c0_i32, %c0_i32_0 : i32, i32
  }
  func.func @transform_8(%arg0: i32, %arg1: i32) -> (i32, i32, i32) {
    %c0_i32 = arith.constant 0 : i32
    %c0_i32_0 = arith.constant 0 : i32
    return %arg0, %c0_i32, %arg1 : i32, i32, i32
  }
}

</mosaic_0001>

<bundles_post_ra>
// kernel: tpu_custom_call.1
= control target key start
LH: loop header
LB: loop body
LE: loop exit
PB: predicated region body
PF: predicated region fallthrough
CT: control target
= control target key end

     0   :  { %s1686_s0 = inlined_call_operand.vmem [shape: bf16[2,16,128], index: 0, kind: input, shape index: {}]   ;;  %s1687_s1 = inlined_call_operand.vmem [shape: f32[2,16,128], index: 1, kind: input, shape index: {}]   ;;  %s1688_s2 = inlined_call_operand.vmem [shape: bf16[32,16], index: 2, kind: input, shape index: {}]   ;;  %s1689_s3 = inlined_call_operand.vmem [shape: f32[32,1], index: 3, kind: input, shape index: {}]   ;;  %s1690_s4 = inlined_call_operand.vmem [shape: bf16[16,16], index: 4, kind: input, shape index: {}]   ;;  %s1691_s5 = inlined_call_operand.vmem [shape: f32[16,1], index: 5, kind: input, shape index: {}]   ;;  %s1692_s6 = inlined_call_operand.vmem [shape: f32[1,128], index: 6, kind: input, shape index: {}]   ;;  %s1693_s7 = inlined_call_operand.<no memory space> [shape: f32[1,1], index: 7, kind: input, shape index: {}]   ;;  %s1694_s8 = inlined_call_operand.hbm [shape: f32[2,16,128], index: 8, kind: output, shape index: {}]  }
   0x1   :  { %13 = sst [smem:[#allocation4]] %s1693_s7 }
   0x2   :  { %14 = vsyncpa [#allocation6], 0 }
   0x3   :  { %16 = vsyncpa [#allocation6 + $0x1], 0  ;;  %s1459_s29 = smov 0   ;;  %s1461_s30 = smov 0  }
   0x4   :  { %s1463_s9 = smov 0   ;;  %s1465_s10 = smov 0  }
   0x5   :  { %s1467_s11 = smov 0   ;;  %s1469_s12 = smov 0  }
   0x6 LB: > { %s1056_s7 = sadd.s32 4294967295, %s1403_s12   ;;  %s1057_s13 = sadd.s32 4294967294, %s1403_s12   ;;  %s1403_s12 = sphi %s1469_s12, %s22_s12   ;;  %s1399_s11 = sphi %s1467_s11, %s1701_s11   ;;  %s1395_s10 = sphi %s1465_s10, %s1700_s10   ;;  %s1391_s9 = sphi %s1463_s9, %s1699_s9   ;;  %s1387_s30 = sphi %s1461_s30, %s1698_s30   ;;  %s1383_s29 = sphi %s1459_s29, %s1697_s29  }
   0x7   : > { %s34_s14 = sadd.s32 1, %s1399_s11  ;;  %s223_s15 = sadd.s32 1, %s1391_s9 }
   0x8   : > { %p36_p0 = scmp.ge.s32.totalorder %s34_s14, 2  ;;  %p233_p1 = scmp.ne.s32.totalorder %s1391_s9, %s1387_s30 }
   0x9   : > { %p234_p2 = scmp.eq.s32.totalorder %s1056_s7, 1  ;;  %p239_p3 = scmp.ne.s32.totalorder %s1387_s30, %s1383_s29 }
   0xa   : > { %s1703_s14 = smov (%p36_p0, %s34_s14), 0  ;;  %p240_p5 = scmp.eq.s32.totalorder %s1057_s13, 1 }
   0xb   : > { %p1499_p4 = por %p234_p2, %p233_p1  ;;  %s218_s17 = ssub.s32 %s1399_s11, %s1703_s14 }
   0xc   : > { %p1060_p6 = scmp.ge.s32.totalorder %s1403_s12, 1  ;;  %p221_p7 = scmp.eq.s32.totalorder %s218_s17, 0 }
   0xd   : > { %p1506_p8 = por %p240_p5, %p239_p3  ;;  %p295_p9 = scmp.lt.s32.totalorder %s1403_s12, 3 }
   0xe   : > { %s1512_s19 = scalar_select %p221_p7, %s1391_s9, %s223_s15  }
   0xf   : > { %p296_p10 = pnand %p1060_p6, %p295_p9 }
  0x10   : > { %p337_p11 = scmp.lt.s32.totalorder (!%p296_p10), %s1395_s10, 1  ;;  %s933_s20 = sld [smem:[#allocation4]] (!%p296_p10) }
  0x11   : > { %299 = sbr.rel (%p296_p10) target bundleno = 1063 (0x427), region = 52  ;;  %s334_s21 = sand.u32 (!%p296_p10), 1, %s1387_s30  }
  0x12   : > { %s1061_s23 = sshll.u32 (!%p296_p10), %s334_s21, 4  ;;  %s1104_s28 = sshll.u32 (!%p296_p10), %s1395_s10, 8 }
  0x13   : > { %s336_s7 = scalar_lea.vmem (!%p296_p10), [#allocation5], %s1061_s23  ;;  %s1408_s23 = smov (!%p296_p10), [#allocation5]  }
  0x16   : > { %v1257_v0 = vld [vmem:[%s1688_s2] sm:$0xff]   ;;  %vm401_vm0 = vcmask 130048   ;;  %s1519_s22 = scalar_select %p337_p11, %s1395_s10, 1  ;;  %v363_v2 = vld [vmem:[%s1689_s3 + $0x10] sm:$0xff]  ;;  %v1405_v3 = vmov 0   ;;  %v362_v4 = vld [vmem:[%s1689_s3 + $0x8] sm:$0xff] }
  0x17   : > { %1146 = vmatprep.mubr.msk.bf16.mxu0 %vm401_vm0, %v1257_v0  ;;  %v361_v1 = vld [vmem:[%s1689_s3] sm:$0xff]  ;;  %1254 = vset.pattern.permute.xlu0 %v1405_v3  ;;  %v364_v5 = vld [vmem:[%s1689_s3 + $0x18] sm:$0xff]  ;;  %v1258_v7 = vld [vmem:[%s1688_s2 + $0x8] sm:$0xff]   ;;  %v1406_v8 = vmov 0.0   ;;  %vm1407_vm1 = vmmov 0   ;;  %s1641_s10 = scalar_lea.sflag [#allocation6], %s334_s21 }
  0x18   : > { %1255 = vset.pattern.permute.xlu1 %v1405_v3  ;;  %s1096_s27 = sshll.u32 %s1519_s22, 3  ;;  %367 = vperm.xlu0 %1254, %v361_v1   ;;  %v1260_v9 = vld [vmem:[%s1690_s4] sm:$0xff]   ;;  %s1097_s24 = sshll.u32 %s1519_s22, 4 }
  0x19   : > { %377 = vperm.xlu1 %1255, %v363_v2   ;;  %s341_s13 = scalar_lea.vmem %s1686_s0, %s1096_s27  ;;  %1174 = vmatprep.subr.bf16.mxu1 %v1406_v8  ;;  %v1079_v50 = vld [vmem:[%s1692_s6] ss:$0 sm:$0xff]  ;;  %s349_s27 = scalar_lea.vmem %s1687_s1, %s1097_s24 }
  0x1a   : > { %v1256_v6 = vld [vmem:[%s341_s13] sm:$0xff]   ;;  %1190 = vmatprep.mubr.msk.bf16.mxu1 %vm1407_vm1, %v1406_v8  ;;  %s964_s13 = sshll.u32 %s336_s7, 4  ;;  %s1637_s22 = scalar_lea.hbm %s1694_s8, %s1104_s28  ;;  %s1639_s13 = int_to_ptr.vmem [resolvable:$true] %s964_s13 }
  0x1b   : > { %1144 = vmatprep.subr.bf16.mxu0 %v1256_v6  ;;  %s1331_s24 = sshll.u32 %s1408_s23, 4  ;;  %s1332_s24 = int_to_ptr.vmem [resolvable:$false] %s1331_s24 }
  0x1c   : > { %372 = vperm.xlu0 %1254, %v362_v4   ;;  %1145 = vmatpush3.bf16.msra.mxu0 %v1256_v6  ;;  %s1333_s25 = scalar_lea.vmem %s1332_s24, 512  ;;  %p1334_p1 = scmp.lt.s32.totalorder %s1639_s13, %s1332_s24 }
  0x1d   : > { %382 = vperm.xlu1 %1255, %v364_v5   ;;  %1150 = vmatprep.subr.bf16.mxu0 %v1406_v8  ;;  %v480_v5 = vld [vmem:[%s1691_s5 + $0x8] sm:$0xff] }
  0x1f   : > { %1147 = vmatmul.mubr.msk.bf16.vlgmr.msra.gmra.mxu0 %vm401_vm0, %v1258_v7 }
  0x20   : > { %1152 = vmatprep.mubr.msk.bf16.mxu0 %vm1407_vm1, %v1406_v8  ;;  %1151 = vmatpush3.bf16.msra.mxu0 %v1256_v6 }
  0x27   : > { %1153 = vmatmul.mubr.msk.bf16.vlgmr.msra.gmra.mxu0 %vm401_vm0, %v1260_v9  ;;  %v479_v9 = vld [vmem:[%s1691_s5] sm:$0xff] }
  0x93   : > { %v368_v11 = vpop.permute.xlu0 %367 }
  0x94   : > { %v378_v10 = vpop.permute.xlu1 %377 }
  0x97   : > { %v373_v18 = vpop.permute.xlu0 %372 }
  0x98   : > { %v383_v14 = vpop.permute.xlu1 %382 }
  0xdf   : > { %v1148_v12 = vpop.f32.mrf.mxu0 }
  0xe0   : > { %v451_v16 = vadd.f32 %v1148_v12, %v378_v10 }
  0xe1   : > { %v442_v13 = vpop.f32.mrf.mxu0 }
  0xe2   : > { %v443_v20 = vadd.f32 %v442_v13, %v368_v11 }
  0xe3   : > { %v1149_v15 = vpop.f32.mrf.mxu0 }
  0xe4   : > { %v454_v17 = vadd.f32 %v1149_v15, %v383_v14 }
  0xe5   : > { %v445_v19 = vpop.f32.mrf.mxu0 }
  0xe6   : > { %v1113_v21 = vpack.c.bf16 %v454_v17, %v451_v16  ;;  %v446_v22 = vadd.f32 %v445_v19, %v373_v18 }
  0xe7   : > { %v1550_v26 = vpop.f32.mrf.mxu0 }
  0xe8   : > { %1120 = vst [vmem:[#allocation2 + $0x8] sm:$0xff] %v1113_v21   ;;  %v1108_v23 = vpack.c.bf16 %v446_v22, %v443_v20 }
  0xe9   : > { %v1154_v27 = vpop.f32.mrf.mxu0 }
  0xea   : > { %1109 = vst [vmem:[#allocation2] sm:$0xff] %v1108_v23  }
  0xeb   : > { %v1552_v28 = vpop.f32.mrf.mxu0 }
  0xed   : > { %v1155_v29 = vpop.f32.mrf.mxu0 }
  0xef   : > { %v1259_v24 = vld [vmem:[#allocation2 + $0x8] sm:$0xff]  }
  0xf0   : > { %1156 = vmatprep.subr.bf16.mxu0 %v1259_v24 }
  0xf1   : > { %v1261_v25 = vld [vmem:[#allocation2] sm:$0xff]   ;;  %1157 = vmatpush3.bf16.msra.mxu0 %v1259_v24 }
  0xf2   : > { %572 = vxpose.xlu0.c.b16.start.end [1/1] (short) %v1261_v25, 128 }
 0x154   : > { %v580_v30 = vpop.trf.xlu0 }
 0x155   : > { %1158 = vmatprep.mubr.msk.bf16.mxu0 %vm401_vm0, %v580_v30 }
 0x158   : > { %v581_v31 = vpop.trf.xlu0 }
 0x159   : > { %1159 = vmatmul.mubr.msk.bf16.vlgmr.msra.gmra.mxu0 %vm401_vm0, %v581_v31 }
 0x15c   : > { %v582_v32 = vpop.trf.xlu0 }
 0x15d   : > { %1162 = vmatprep.mubr.msk.bf16.mxu0 %vm401_vm0, %v582_v32 }
 0x160   : > { %v583_v33 = vpop.trf.xlu0 }
 0x161   : > { %1163 = vmatmul.mubr.msk.bf16.gmra.mxu0 %vm401_vm0, %v583_v33 }
 0x164   : > { %v584_v34 = vpop.trf.xlu0 }
 0x165   : > { %1166 = vmatprep.mubr.msk.bf16.mxu0 %vm401_vm0, %v584_v34 }
 0x168   : > { %v585_v35 = vpop.trf.xlu0 }
 0x169   : > { %1167 = vmatmul.mubr.msk.bf16.gmra.mxu0 %vm401_vm0, %v585_v35 }
 0x16c   : > { %v586_v36 = vpop.trf.xlu0 }
 0x16d   : > { %1170 = vmatprep.mubr.msk.bf16.mxu0 %vm401_vm0, %v586_v36 }
 0x170   : > { %v587_v37 = vpop.trf.xlu0 }
 0x171   : > { %1171 = vmatmul.mubr.msk.bf16.gmra.mxu0 %vm401_vm0, %v587_v37 }
 0x219   : > { %v1160_v38 = vpop.f32.mrf.mxu0 }
 0x21a   : > { %v1586_v6 = vadd.f32 %v1160_v38, %v1079_v50 }
 0x21b   : > { %v653_v39 = vpop.f32.mrf.mxu0 }
 0x21c   : > { %v1589_v7 = vadd.f32 %v1079_v50, %v653_v39 }
 0x21d   : > { %v1161_v40 = vpop.f32.mrf.mxu0 }
 0x21e   : > { %v665_v60 = vadd.f32 %v1161_v40, %v1079_v50 }
 0x21f   : > { %v656_v41 = vpop.f32.mrf.mxu0 }
 0x220   : > { %v657_v62 = vadd.f32 %v1079_v50, %v656_v41 }
 0x221   : > { %v1164_v42 = vpop.f32.mrf.mxu0 }
 0x222   : > { %v1574_v2 = vadd.f32 %v1164_v42, %v1079_v50 }
 0x223   : > { %v669_v43 = vpop.f32.mrf.mxu0 }
 0x224   : > { %v1580_v4 = vadd.f32 %v1079_v50, %v669_v43 }
 0x225   : > { %v1165_v44 = vpop.f32.mrf.mxu0 }
 0x226   : > { %v1577_v3 = vadd.f32 %v1165_v44, %v1079_v50 }
 0x227   : > { %v672_v45 = vpop.f32.mrf.mxu0 }
 0x228   : > { %v1565_v57 = vadd.f32 %v1079_v50, %v672_v45 }
 0x229   : > { %v1168_v46 = vpop.f32.mrf.mxu0 }
 0x22a   : > { %v1567_v58 = vadd.f32 %v1168_v46, %v1079_v50 }
 0x22b   : > { %v685_v47 = vpop.f32.mrf.mxu0 }
 0x22c   : > { %v1571_v0 = vadd.f32 %v1079_v50, %v685_v47 }
 0x22d   : > { %v1169_v48 = vpop.f32.mrf.mxu0 }
 0x22e   : > { %v697_v63 = vadd.f32 %v1169_v48, %v1079_v50 }
 0x22f   : > { %v688_v49 = vpop.f32.mrf.mxu0 }
 0x230   : > { %v689_v1 = vadd.f32 %v1079_v50, %v688_v49 }
 0x231   : > { %v1172_v51 = vpop.f32.mrf.mxu0 }
 0x232   : > { %v710_v52 = vadd.f32 %v1172_v51, %v1079_v50 }
 0x233   : > { %v701_v53 = vpop.f32.mrf.mxu0 }
 0x234   : > { %744 = vmax.xlane.f32.xlu1 %v710_v52  ;;  %v702_v55 = vadd.f32 %v1079_v50, %v701_v53 }
 0x235   : > { %v1173_v54 = vpop.f32.mrf.mxu0 }
 0x236   : > { %v713_v56 = vadd.f32 %v1173_v54, %v1079_v50 }
 0x237   : > { %v704_v59 = vpop.f32.mrf.mxu0 }
 0x238   : > { %746 = vmax.xlane.f32.xlu0 %v713_v56  ;;  %740 = vmax.xlane.f32.xlu1 %v702_v55  ;;  %v705_v61 = vadd.f32 %v1079_v50, %v704_v59 }
 0x23c   : > { %726 = vmax.xlane.f32.xlu0 %v1565_v57  ;;  %736 = vmax.xlane.f32.xlu1 %v1567_v58 }
 0x240   : > { %722 = vmax.xlane.f32.xlu0 %v665_v60  ;;  %742 = vmax.xlane.f32.xlu1 %v705_v61 }
 0x244   : > { %718 = vmax.xlane.f32.xlu0 %v657_v62  ;;  %738 = vmax.xlane.f32.xlu1 %v697_v63 }
 0x248   : > { %732 = vmax.xlane.f32.xlu1 %v1571_v0 }
 0x24c   : > { %734 = vmax.xlane.f32.xlu1 %v689_v1 }
 0x250   : > { %728 = vmax.xlane.f32.xlu1 %v1574_v2 }
 0x254   : > { %730 = vmax.xlane.f32.xlu1 %v1577_v3 }
 0x258   : > { %724 = vmax.xlane.f32.xlu1 %v1580_v4 }
 0x25a   : > { %488 = vperm.xlu0 %1254, %v480_v5  }
 0x25c   : > { %720 = vmax.xlane.f32.xlu1 %v1586_v6 }
 0x260   : > { %716 = vmax.xlane.f32.xlu1 %v1589_v7 }
 0x271   : > { %483 = vperm.xlu1 %1255, %v479_v9  }
 0x2bd   : > { %v745_v10 = vpop.xlane.xlu1 %744 }
 0x2be   : > { %v762_v11 = vsub.f32 %v710_v52, %v745_v10 }
 0x2c0   : > { %v792_v12 = vmul.f32 1.442695, %v762_v11 }
 0x2c1   : > { %v747_v13 = vpop.xlane.xlu0 %746  ;;  %v741_v14 = vpop.xlane.xlu1 %740 }
 0x2c2   : > { %v763_v15 = vsub.f32 %v713_v56, %v747_v13  ;;  %1263 = vpow2.f32 %v792_v12  ;;  %v760_v19 = vsub.f32 %v702_v55, %v741_v14 }
 0x2c4   : > { %v794_v16 = vmul.f32 1.442695, %v763_v15  ;;  %v788_v22 = vmul.f32 1.442695, %v760_v19 }
 0x2c5   : > { %v727_v17 = vpop.xlane.xlu0 %726  ;;  %v737_v18 = vpop.xlane.xlu1 %736 }
 0x2c6   : > { %1265 = vpow2.f32 %v794_v16  ;;  %v758_v32 = vsub.f32 %v1567_v58, %v737_v18  ;;  %v753_v37 = vsub.f32 %v1565_v57, %v727_v17 }
 0x2c7   : > { %1267 = vpow2.f32 %v788_v22 }
 0x2c8   : > { %v784_v40 = vmul.f32 1.442695, %v758_v32  ;;  %v774_v43 = vmul.f32 1.442695, %v753_v37 }
 0x2c9   : > { %v723_v20 = vpop.xlane.xlu0 %722  ;;  %v743_v21 = vpop.xlane.xlu1 %742 }
 0x2ca   : > { %v761_v23 = vsub.f32 %v705_v61, %v743_v21  ;;  %v751_v29 = vsub.f32 %v665_v60, %v723_v20 }
 0x2cc   : > { %v790_v24 = vmul.f32 1.442695, %v761_v23  ;;  %v770_v38 = vmul.f32 1.442695, %v751_v29 }
 0x2cd   : > { %v719_v25 = vpop.xlane.xlu0 %718  ;;  %v739_v27 = vpop.xlane.xlu1 %738 }
 0x2ce   : > { %v749_v30 = vsub.f32 %v657_v62, %v719_v25  ;;  %v759_v31 = vsub.f32 %v697_v63, %v739_v27  ;;  %1269 = vpow2.f32 %v790_v24 }
 0x2cf   : > { %v1596_v36 = vpop.eup %1263 }
 0x2d0   : > { %v766_v33 = vmul.f32 1.442695, %v749_v30  ;;  %v786_v34 = vmul.f32 1.442695, %v759_v31 }
 0x2d1   : > { %v733_v35 = vpop.xlane.xlu1 %732 }
 0x2d2   : > { %1271 = vpow2.f32 %v766_v33  ;;  %v756_v45 = vsub.f32 %v1571_v0, %v733_v35 }
 0x2d3   : > { %v1599_v39 = vpop.eup %1265  ;;  %1273 = vpow2.f32 %v786_v34 }
 0x2d4   : > { %v835_v41 = vpack.c.bf16 %v1599_v39, %v1596_v36  ;;  %1275 = vpow2.f32 %v770_v38  ;;  %v1605_v48 = vpop.eup %1267  ;;  %v780_v49 = vmul.f32 1.442695, %v756_v45 }
 0x2d5   : > { %v735_v42 = vpop.xlane.xlu1 %734  ;;  %1277 = vpow2.f32 %v784_v40  ;;  %v489_v12 = vpop.permute.xlu0 %488 }
 0x2d6   : > { %v757_v44 = vsub.f32 %v689_v1, %v735_v42  ;;  %1175 = vmatpush3.bf16.xpose.msra.mxu1 %v835_v41  ;;  %1279 = vpow2.f32 %v774_v43 }
 0x2d7   : > { %1176 = vmatprep.subr.bf16.mxu1 %v1406_v8 }
 0x2d8   : > { %v782_v46 = vmul.f32 1.442695, %v757_v44 }
 0x2d9   : > { %v729_v47 = vpop.xlane.xlu1 %728 }
 0x2da   : > { %1281 = vpow2.f32 %v782_v46  ;;  %v754_v55 = vsub.f32 %v1574_v2, %v729_v47 }
 0x2db   : > { %v1270_v50 = vpop.eup %1269  ;;  %1283 = vpow2.f32 %v780_v49 }
 0x2dc   : > { %v834_v52 = vpack.c.bf16 %v1270_v50, %v1605_v48  ;;  %v776_v60 = vmul.f32 1.442695, %v754_v55 }
 0x2dd   : > { %v731_v51 = vpop.xlane.xlu1 %730 }
 0x2de   : > { %v755_v53 = vsub.f32 %v1577_v3, %v731_v51  ;;  %1177 = vmatpush3.bf16.xpose.msra.mxu1 %v834_v52 }
 0x2df   : > { %v1609_v54 = vpop.eup %1271  ;;  %1178 = vmatprep.subr.bf16.mxu1 %v1406_v8 }
 0x2e0   : > { %v778_v56 = vmul.f32 1.442695, %v755_v53  ;;  %798 = vadd.xlane.f32.xlu0 %v1609_v54  ;;  %v1274_v58 = vpop.eup %1273 }
 0x2e1   : > { %v725_v57 = vpop.xlane.xlu1 %724  ;;  %v1276_v59 = vpop.eup %1275 }
 0x2e2   : > { %1285 = vpow2.f32 %v778_v56  ;;  %v1278_v61 = vpop.eup %1277  ;;  %v752_v62 = vsub.f32 %v1580_v4, %v725_v57 }
 0x2e3   : > { %v833_v0 = vpack.c.bf16 %v1274_v58, %v1278_v61  ;;  %v1280_v2 = vpop.eup %1279  ;;  %1287 = vpow2.f32 %v776_v60 }
 0x2e4   : > { %802 = vadd.xlane.f32.xlu0 %v1276_v59  ;;  %v772_v5 = vmul.f32 1.442695, %v752_v62  ;;  %v934_v62 = vlaneseq }
 0x2e5   : > { %v721_v63 = vpop.xlane.xlu1 %720 }
 0x2e6   : > { %v750_v1 = vsub.f32 %v1586_v6, %v721_v63  ;;  %1179 = vmatpush3.bf16.xpose.msra.mxu1 %v833_v0  ;;  %v537_v6 = vadd.f32 %v1552_v28, %v489_v12  ;;  %v935_v63 = vshrl.u32 %v934_v62, 7 }
 0x2e7   : > { %1180 = vmatprep.subr.bf16.mxu1 %v1406_v8  ;;  %v1282_v10 = vpop.eup %1281 }
 0x2e8   : > { %v768_v3 = vmul.f32 1.442695, %v750_v1  ;;  %806 = vadd.xlane.f32.xlu0 %v1280_v2  ;;  %v1284_v13 = vpop.eup %1283  ;;  %v936_v0 = vsub.s32 0, %v935_v63 }
 0x2e9   : > { %v717_v9 = vpop.xlane.xlu1 %716  ;;  %v832_v15 = vpack.c.bf16 %v1282_v10, %v1284_v13 }
 0x2ea   : > { %1289 = vpow2.f32 %v768_v3  ;;  %v748_v11 = vsub.f32 %v1589_v7, %v717_v9  ;;  %v940_v3 = vstv %s933_s20  ;;  %s1327_s20 = scalar_lea.vmem %s1639_s13, 256 }
 0x2eb   : > { %1291 = vpow2.f32 %v772_v5  ;;  %p1328_p12 = scmp.ne.s32.totalorder %s1639_s13, %s1327_s20  ;;  %p1335_p2 = scmp.lt.s32.totalorder %s1333_s25, %s1327_s20 }
 0x2ec   : > { %v764_v4 = vmul.f32 1.442695, %v748_v11  ;;  %v944_v11 = vld [vmem:[%s349_s27 + $0x8] sm:$0xff] }
 0x2ed   : > { %v484_v14 = vpop.permute.xlu1 %483  ;;  %p1329_p13 = pnand %p1328_p12, %p1499_p4  ;;  %p1336_p3 = por %p1335_p2, %p1334_p1 }
 0x2ee   : > { %1293 = vpow2.f32 %v764_v4  ;;  %v534_v16 = vadd.f32 %v1550_v26, %v484_v14  ;;  %1181 = vmatpush3.bf16.xpose.msra.mxu1 %v832_v15 }
 0x2ef   : > { %v1286_v17 = vpop.eup %1285  ;;  %1182 = vmatprep.subr.bf16.mxu1 %v1406_v8  ;;  %p1330_p0 = pneg %p1329_p13 }
 0x2f0   : > { %v1118_v18 = vpack.c.bf16 %v537_v6, %v534_v16  ;;  %810 = vadd.xlane.f32.xlu0 %v1286_v17  ;;  %v1288_v19 = vpop.eup %1287 }
 0x2f1   : > { %v831_v7 = vpack.c.bf16 %v1286_v17, %v1288_v19  ;;  %p1337_p5 = pnand %p1336_p3, %p1330_p0 }
 0x2f2   : > { %1119 = vst [vmem:[#allocation3] sm:$0xff] %v1118_v18  }
 0x2f4   : > { %814 = vadd.xlane.f32.xlu0 %v1282_v10  ;;  %v943_v10 = vld [vmem:[%s349_s27] sm:$0xff] }
 0x2f6   : > { %1183 = vmatpush3.bf16.xpose.msra.mxu1 %v831_v7 }
 0x2f7   : > { %v1290_v20 = vpop.eup %1289  ;;  %1184 = vmatprep.subr.bf16.mxu1 %v1406_v8 }
 0x2f8   : > { %818 = vadd.xlane.f32.xlu0 %v1274_v58  ;;  %800 = vadd.xlane.f32.xlu1 %v1290_v20  ;;  %v1292_v28 = vpop.eup %1291  ;;  %v829_v22 = vpack.c.bf16 %v1276_v59, %v1290_v20 }
 0x2f9   : > { %v830_v26 = vpack.c.bf16 %v1280_v2, %v1292_v28  ;;  %v1262_v24 = vld [vmem:[#allocation3] sm:$0xff]  }
 0x2fb   : > { %v1294_v21 = vpop.eup %1293 }
 0x2fc   : > { %822 = vadd.xlane.f32.xlu0 %v1270_v50  ;;  %796 = vadd.xlane.f32.xlu1 %v1294_v21  ;;  %v828_v23 = vpack.c.bf16 %v1609_v54, %v1294_v21 }
 0x2fe   : > { %1185 = vmatpush3.bf16.xpose.msra.mxu1 %v830_v26 }
 0x2ff   : > { %1186 = vmatprep.subr.bf16.mxu1 %v1406_v8 }
 0x300   : > { %826 = vadd.xlane.f32.xlu0 %v1599_v39  ;;  %808 = vadd.xlane.f32.xlu1 %v1288_v19 }
 0x304   : > { %804 = vadd.xlane.f32.xlu1 %v1292_v28 }
 0x306   : > { %1187 = vmatpush3.bf16.xpose.msra.mxu1 %v829_v22 }
 0x307   : > { %1188 = vmatprep.subr.bf16.mxu1 %v1406_v8 }
 0x308   : > { %816 = vadd.xlane.f32.xlu1 %v1278_v61 }
 0x30c   : > { %812 = vadd.xlane.f32.xlu1 %v1284_v13 }
 0x30e   : > { %1189 = vmatpush3.bf16.xpose.msra.mxu1 %v828_v23 }
 0x310   : > { %824 = vadd.xlane.f32.xlu1 %v1596_v36 }
 0x314   : > { %820 = vadd.xlane.f32.xlu1 %v1605_v48 }
 0x315   : > { %1191 = vmatmul.mubr.bf16.vlgmr.msra.gmra.mxu1 %v1262_v24 }
 0x369   : > { %v799_v29 = vpop.xlane.xlu0 %798 }
 0x36d   : > { %v803_v31 = vpop.xlane.xlu0 %802 }
 0x371   : > { %v807_v34 = vpop.xlane.xlu0 %806 }
 0x379   : > { %v811_v38 = vpop.xlane.xlu0 %810 }
 0x37d   : > { %v815_v42 = vpop.xlane.xlu0 %814 }
 0x381   : > { %v801_v25 = vpop.xlane.xlu1 %800  ;;  %v819_v46 = vpop.xlane.xlu0 %818 }
 0x385   : > { %v797_v27 = vpop.xlane.xlu1 %796  ;;  %v823_v50 = vpop.xlane.xlu0 %822 }
 0x386   : > { %1295 = vrcp.f32 %v797_v27 }
 0x387   : > { %1297 = vrcp.f32 %v799_v29 }
 0x388   : > { %1299 = vrcp.f32 %v801_v25 }
 0x389   : > { %v809_v30 = vpop.xlane.xlu1 %808  ;;  %1301 = vrcp.f32 %v803_v31  ;;  %v827_v53 = vpop.xlane.xlu0 %826 }
 0x38d   : > { %v805_v32 = vpop.xlane.xlu1 %804 }
 0x38e   : > { %1303 = vrcp.f32 %v805_v32 }
 0x38f   : > { %1305 = vrcp.f32 %v807_v34 }
 0x390   : > { %1307 = vrcp.f32 %v809_v30 }
 0x391   : > { %v817_v36 = vpop.xlane.xlu1 %816  ;;  %1309 = vrcp.f32 %v811_v38 }
 0x393   : > { %v1296_v8 = vpop.eup %1295 }
 0x394   : > { %901 = vxpose.xlu1.b32.start [1/16] (narrow) %v1296_v8, 8  ;;  %v1298_v33 = vpop.eup %1297 }
 0x395   : > { %v1300_v35 = vpop.eup %1299  ;;  %v813_v40 = vpop.xlane.xlu1 %812 }
 0x396   : > { %v1302_v37 = vpop.eup %1301  ;;  %1311 = vrcp.f32 %v813_v40 }
 0x397   : > { %1313 = vrcp.f32 %v815_v42 }
 0x398   : > { %902 = vxpose.xlu1.b32.cont [2/16] (narrow) %v1298_v33, 8  ;;  %1315 = vrcp.f32 %v817_v36 }
 0x399   : > { %v825_v44 = vpop.xlane.xlu1 %824  ;;  %1317 = vrcp.f32 %v819_v46 }
 0x39b   : > { %v1304_v39 = vpop.eup %1303 }
 0x39c   : > { %903 = vxpose.xlu1.b32.cont [3/16] (narrow) %v1300_v35, 8  ;;  %v1306_v41 = vpop.eup %1305 }
 0x39d   : > { %v1308_v43 = vpop.eup %1307  ;;  %v821_v48 = vpop.xlane.xlu1 %820 }
 0x39e   : > { %v1310_v45 = vpop.eup %1309  ;;  %1319 = vrcp.f32 %v821_v48 }
 0x39f   : > { %1321 = vrcp.f32 %v823_v50 }
 0x3a0   : > { %904 = vxpose.xlu1.b32.cont [4/16] (narrow) %v1302_v37, 8  ;;  %1323 = vrcp.f32 %v825_v44 }
 0x3a1   : > { %1325 = vrcp.f32 %v827_v53 }
 0x3a3   : > { %v1312_v47 = vpop.eup %1311 }
 0x3a4   : > { %905 = vxpose.xlu1.b32.cont [5/16] (narrow) %v1304_v39, 8  ;;  %v1314_v49 = vpop.eup %1313 }
 0x3a5   : > { %v1316_v51 = vpop.eup %1315 }
 0x3a6   : > { %v1318_v52 = vpop.eup %1317 }
 0x3a8   : > { %906 = vxpose.xlu1.b32.cont [6/16] (narrow) %v1306_v41, 8 }
 0x3ab   : > { %v1320_v54 = vpop.eup %1319 }
 0x3ac   : > { %907 = vxpose.xlu1.b32.cont [7/16] (narrow) %v1308_v43, 8  ;;  %v1322_v55 = vpop.eup %1321 }
 0x3ad   : > { %v1324_v56 = vpop.eup %1323 }
 0x3ae   : > { %v1326_v57 = vpop.eup %1325 }
 0x3b0   : > { %908 = vxpose.xlu1.b32.cont [8/16] (narrow) %v1310_v45, 8 }
 0x3b4   : > { %909 = vxpose.xlu1.b32.cont [9/16] (narrow) %v1312_v47, 8 }
 0x3b8   : > { %910 = vxpose.xlu1.b32.cont [10/16] (narrow) %v1314_v49, 8 }
 0x3bc   : > { %911 = vxpose.xlu1.b32.cont [11/16] (narrow) %v1316_v51, 8 }
 0x3c0   : > { %912 = vxpose.xlu1.b32.cont [12/16] (narrow) %v1318_v52, 8 }
 0x3c4   : > { %913 = vxpose.xlu1.b32.cont [13/16] (narrow) %v1320_v54, 8 }
 0x3c8   : > { %914 = vxpose.xlu1.b32.cont [14/16] (narrow) %v1322_v55, 8 }
 0x3cc   : > { %915 = vxpose.xlu1.b32.cont [15/16] (narrow) %v1324_v56, 8 }
 0x3d0   : > { %916 = vxpose.xlu1.b32.end [16/16] (narrow) %v1326_v57, 8 }
 0x3d5   : > { %v878_v58 = vpop.f32.mrf.mxu1 }
 0x3d7   : > { %v1192_v59 = vpop.f32.mrf.mxu1 }
 0x3d9   : > { %v881_v60 = vpop.f32.mrf.mxu1 }
 0x3db   : > { %v1193_v61 = vpop.f32.mrf.mxu1 }
 0x410   : > { %v917_v1 = vpop.trf.xlu1 }
 0x411   : > { %v937_v2 = vrot.slane %v917_v1, %v936_v0 }
 0x413   : > { %v938_v5 = vmul.f32 %v937_v2, %v878_v58  ;;  %v939_v9 = vmul.f32 %v937_v2, %v881_v60 }
 0x415   : > { %v941_v12 = vmul.f32 %v940_v3, %v938_v5  ;;  %v942_v13 = vmul.f32 %v940_v3, %v939_v9 }
 0x417   : > { %v945_v4 = vadd.f32 %v943_v10, %v941_v12  ;;  %v946_v14 = vadd.f32 %v944_v11, %v942_v13 }
 0x419   : > { %947 = vst [vmem:[%s336_s7] sm:$0xff] %v945_v4  ;;  %948 = vst [vmem:[%s336_s7 + $0x8] sm:$0xff] %v946_v14 }
 0x41a   : > { %1340 = shalt.err (!%p1337_p5)
}
 0x41b   : > { %s1341_s21 = scalar_lea.hbm %s1637_s22, 256  ;;  %s1345_s28 = scalar_lea.hbm %s1694_s8, 512 }
 0x41c   : > { %p1342_p6 = scmp.ne.s32.totalorder %s1637_s22, %s1341_s21  ;;  %p1346_p10 = scmp.lt.s32.totalorder %s1637_s22, %s1694_s8 }
 0x41d   : > { %p1347_p11 = scmp.lt.s32.totalorder %s1345_s28, %s1341_s21 }
 0x41e   : > { %p1343_p7 = pnand %p1342_p6, %p1499_p4 }
 0x41f   : > { %p1348_p12 = por %p1347_p11, %p1346_p10 }
 0x420   : > { %p1344_p9 = pneg %p1343_p7 }
 0x422   : > { %p1349_p13 = pnand %p1348_p12, %p1344_p9 }
 0x424   : > { %1352 = shalt.err (!%p1349_p13)
}
 0x425   : > { %s1409_s17 = smov 128   ;;  %s1410_s20 = smov 8  }
 0x426   : > { %1194 = dma.vmem_to_hbm [thread:$0]  (%p1499_p4), %s1639_s13, 256, %s1637_s22, %s1641_s10, %s1409_s17, %s1409_s17, %s1410_s20  }
 0x427 PF: > { %p1200_p0 = scmp.ge.s32.totalorder %s1403_s12, 2  ;;  %s979_s23 = sand.u32 1, %s1383_s29  }
 0x428   : > { %s980_s24 = scalar_lea.sflag [#allocation6], %s979_s23 }
 0x429   : > { %p1197_p1 = pnand %p1200_p0, %p1506_p8 }
 0x42b   : > { %p1198_p2 = pneg %p1197_p1 }
 0x42d   : > { %1378 = dma.done.wait (%p1198_p2), %s980_s24, 256  }
 0x42e   : > { %1380 = vsyncadd (%p1198_p2), %s980_s24, 4294967040  ;;  %s22_s12 = sadd.s32 1, %s1403_s12   ;;  %s1697_s29 = smov %s1387_s30 }
 0x42f   : > { %p19_p3 = scmp.ge.s32.totalorder %s22_s12, 4   ;;  %s1698_s30 = smov %s1391_s9 }
 0x430   : > { %s1699_s9 = smov %s1512_s19  ;;  %s1700_s10 = smov %s1399_s11 }
 0x431   : > { %s1701_s11 = smov %s1703_s14  ;;  %21 = sbr.rel (!%p19_p3) target bundleno = 6 (0x6), region = 95 }
 0x436   :  { %985 = vsyncpa [#allocation6], 1 }
 0x437   :  { %987 = vsyncpa [#allocation6 + $0x1], 1 }

</bundles_post_ra>
